<compile_context>
chip_gen: v6e
topology: v6e:2x2x1
jax: 0.10.0
libtpu: 0.0.40
codegen_flags: <defaults>
</compile_context>

<pallas_src>
import jax
import jax.numpy as jnp
from jax.experimental import pallas as pl
from jax.experimental.pallas import tpu as pltpu


def _round_up(x, m):
    return (x + m - 1) // m * m


def _msg_passing_kernel(adj_ref, x_ref, w_ref, b_ref, out_ref, acc_ref):
    """One (row-tile i, reduction-tile k) step of g(A @ X), g = Linear.

    adj_ref : [tm, tk]  bf16   tile of adjacency
    x_ref   : [tk, F]   bf16   matching row-slab of node features
    w_ref   : [F, Hp]   bf16   Linear weight (lane-padded to Hp)
    b_ref   : [1, Hp]   f32    Linear bias   (lane-padded to Hp)
    out_ref : [tm, Hp]  f32    output tile (resident across k)
    acc_ref : [tm, F]   f32    VMEM accumulator for ne = A @ X
    """
    k = pl.program_id(1)

    @pl.when(k == 0)
    def _init():
        acc_ref[...] = jnp.zeros_like(acc_ref)

    # Partial neighbor aggregation on the MXU, f32 accumulation.
    acc_ref[...] += jnp.dot(adj_ref[...], x_ref[...],
                            preferred_element_type=jnp.float32)

    @pl.when(k == pl.num_programs(1) - 1)
    def _finalize():
        ne = acc_ref[...].astype(w_ref.dtype)        # bf16 for the MXU
        y = jnp.dot(ne, w_ref[...], preferred_element_type=jnp.float32)
        out_ref[...] = (y + b_ref[...]).astype(out_ref.dtype)


def one_way_message_passing(in_vec, adj_mat, w, b, *, tm=256, tk=512):
    """Compute g(adj_mat @ in_vec) with g = Linear(F, H): (A @ X) @ W + b."""
    n, f = in_vec.shape
    assert adj_mat.shape == (n, n)
    f_w, h = w.shape
    assert f_w == f

    # ---- tile sizing -------------------------------------------------------
    # Row tile (MXU M axis): multiple of 8 sublanes; keep >=2 row blocks when
    # possible so both v7x TensorCores get work.
    tm = max(8, min(tm, n))
    tm = _round_up(tm, 8)
    n_r8 = _round_up(n, 8)
    if n_r8 // tm < 2 and n_r8 >= 16:
        tm = _round_up(pl.cdiv(n_r8, 2), 8)
    # Reduction tile over adjacency columns: multiple of 128 lanes.
    tk = max(128, min(tk, _round_up(n, 128)))
    tk = _round_up(tk, 128)

    # ---- padding: tile multiples + lane-dense output -----------------------
    h_pad = _round_up(h, 128)        # lane-dense stores (avoid masked vst)
    n_r = _round_up(n, tm)           # padded rows of A / out
    n_c = _round_up(n, tk)           # padded cols of A / rows of X

    adj_p = jnp.pad(adj_mat.astype(jnp.bfloat16), ((0, n_r - n), (0, n_c - n)))
    x_p = jnp.pad(in_vec.astype(jnp.bfloat16), ((0, n_c - n), (0, 0)))
    w_p = jnp.pad(w.astype(jnp.bfloat16), ((0, 0), (0, h_pad - h)))
    b_p = jnp.pad(b.astype(jnp.float32).reshape(1, h), ((0, 0), (0, h_pad - h)))

    grid = (n_r // tm, n_c // tk)

    # ---- VMEM budget (double-buffered A/X/out + resident W/b/acc) ----------
    est_vmem = (2 * tm * tk * 2        # A tiles, bf16, double-buffered
                + 2 * tk * f * 2       # X slabs, bf16, double-buffered
                + f * h_pad * 2        # W (grid-invariant, tiny)
                + h_pad * 4            # b
                + tm * f * 4           # f32 accumulator scratch
                + 2 * tm * h_pad * 4)  # out tiles, f32, double-buffered
    vmem_limit = int(min(48 * 1024 * 1024,
                         max(32 * 1024 * 1024, 4 * est_vmem)))

    out_padded = pl.pallas_call(
        _msg_passing_kernel,
        out_shape=jax.ShapeDtypeStruct((n_r, h_pad), jnp.float32),
        grid_spec=pltpu.PrefetchScalarGridSpec(
            num_scalar_prefetch=0,
            grid=grid,
            in_specs=[
                pl.BlockSpec((tm, tk), lambda i, k: (i, k)),    # A tile
                pl.BlockSpec((tk, f), lambda i, k: (k, 0)),     # X slab
                # W / b are grid-invariant and < 10 KiB; default buffering
                # costs negligible VMEM, so no pipeline_mode override needed.
                pl.BlockSpec((f, h_pad), lambda i, k: (0, 0)),  # W
                pl.BlockSpec((1, h_pad), lambda i, k: (0, 0)),  # b
            ],
            out_specs=pl.BlockSpec((tm, h_pad), lambda i, k: (i, 0)),
            scratch_shapes=[pltpu.VMEM((tm, f), jnp.float32)],
        ),
        compiler_params=pltpu.CompilerParams(
            dimension_semantics=("parallel", "arbitrary"),
            vmem_limit_bytes=vmem_limit,
        ),
    )(adj_p, x_p, w_p, b_p)

    return out_padded[:n, :h].astype(in_vec.dtype)


if __name__ == "__main__":
    # Small deterministic problem; N=256 so both grid axes have >1 step
    # with tm=tk=128 (exercises row-parallelism and the K accumulator).
    N, F, H = 256, 32, 32

    key = jax.random.PRNGKey(0)
    k_adj, k_x, k_w, k_b = jax.random.split(key, 4)

    adj_mat = (jax.random.uniform(k_adj, (N, N)) > 0.5).astype(jnp.float32)
    in_vec = jax.random.normal(k_x, (N, F), dtype=jnp.float32)

    # Deterministic parameter init for g = Linear(F, H)
    w = jax.random.normal(k_w, (F, H), dtype=jnp.float32) / jnp.sqrt(F)
    b = jax.random.normal(k_b, (H,), dtype=jnp.float32) * 0.01

    out = one_way_message_passing(in_vec, adj_mat, w, b, tm=128, tk=128)
    out = jax.block_until_ready(out)

    # Full-precision f32 reference; kernel uses bf16 MXU inputs with f32
    # accumulation, so compare with a bf16-appropriate tolerance.
    ne_ref = jnp.dot(adj_mat, in_vec, precision=jax.lax.Precision.HIGHEST)
    ref = jnp.dot(ne_ref, w, precision=jax.lax.Precision.HIGHEST) + b[None, :]

    assert out.shape == (N, H)
    err = float(jnp.max(jnp.abs(out - ref)))
    scale = float(jnp.max(jnp.abs(ref)))
    assert err <= 5e-2 * scale + 1e-2, f"mismatch: err={err}, scale={scale}"

    print("KERNEL_OK")
</pallas_src>

<mosaic_0001>
module attributes {stable_mosaic.version = 11 : i64} {
  func.func @_msg_passing_kernel(%arg0: i32, %arg1: i32, %arg2: memref<128x128xbf16, #tpu.memory_space<vmem>>, %arg3: memref<128x32xbf16, #tpu.memory_space<vmem>>, %arg4: memref<32x128xbf16, #tpu.memory_space<vmem>>, %arg5: memref<1x128xf32, #tpu.memory_space<vmem>>, %arg6: memref<128x128xf32, #tpu.memory_space<vmem>>, %arg7: memref<128x32xf32, #tpu.memory_space<vmem>>) attributes {dimension_semantics = [#tpu.dimension_semantics<parallel>, #tpu.dimension_semantics<arbitrary>], iteration_bounds = array<i64: 2, 2>, scalar_prefetch = 0 : i64, scratch_operands = 1 : i64, tpu.core_type = #tpu.core_type<tc>, window_params = [{transform_indices = @transform_0, window_bounds = array<i64: 128, 128>}, {transform_indices = @transform_1, window_bounds = array<i64: 128, 32>}, {pipeline_mode = #tpu.pipeline_mode<synchronous>, transform_indices = @transform_2, window_bounds = array<i64: 32, 128>}, {pipeline_mode = #tpu.pipeline_mode<synchronous>, transform_indices = @transform_3, window_bounds = array<i64: 1, 128>}, {transform_indices = @transform_4, window_bounds = array<i64: 128, 128>}]} {
    %c0_i32 = arith.constant 0 : i32
    %0 = arith.cmpi eq, %arg1, %c0_i32 : i32
    %1 = arith.extui %0 : i1 to i32
    %c0_i32_0 = arith.constant 0 : i32
    %2 = arith.cmpi ne, %1, %c0_i32_0 : i32
    scf.if %2 {
      %cst_9 = arith.constant 0.000000e+00 : f32
      %12 = vector.broadcast %cst_9 : f32 to vector<128x32xf32>
      %c0_10 = arith.constant 0 : index
      %c0_11 = arith.constant 0 : index
      %13 = vector.load %arg7[%c0_10, %c0_11] : memref<128x32xf32, #tpu.memory_space<vmem>>, vector<128x32xf32>
      tpu.vector_store %arg7[%c0_10, %c0_11], %12 {strides = array<i32>} : memref<128x32xf32, #tpu.memory_space<vmem>>, vector<128x32xf32>,
    } else {
    }
    %c0 = arith.constant 0 : index
    %c0_1 = arith.constant 0 : index
    %3 = vector.load %arg7[%c0, %c0_1] : memref<128x32xf32, #tpu.memory_space<vmem>>, vector<128x32xf32>
    %c0_2 = arith.constant 0 : index
    %c0_3 = arith.constant 0 : index
    %4 = vector.load %arg2[%c0_2, %c0_3] : memref<128x128xbf16, #tpu.memory_space<vmem>>, vector<128x128xbf16>
    %c0_4 = arith.constant 0 : index
    %c0_5 = arith.constant 0 : index
    %5 = vector.load %arg3[%c0_4, %c0_5] : memref<128x32xbf16, #tpu.memory_space<vmem>>, vector<128x32xbf16>
    %cst = arith.constant dense<0.000000e+00> : vector<128x32xf32>
    %6 = tpu.matmul %4, %5, %cst {dimension_numbers = #tpu.dot_dimension_numbers<[1], [0], [0], [1], [0, 0, 1, 1], [], []>} : vector<128x128xbf16>, vector<128x32xbf16>, vector<128x32xf32> -> vector<128x32xf32>
    %7 = arith.addf %3, %6 : vector<128x32xf32>
    %c0_6 = arith.constant 0 : index
    %c0_7 = arith.constant 0 : index
    %8 = vector.load %arg7[%c0_6, %c0_7] : memref<128x32xf32, #tpu.memory_space<vmem>>, vector<128x32xf32>
    tpu.vector_store %arg7[%c0_6, %c0_7], %7 {strides = array<i32>} : memref<128x32xf32, #tpu.memory_space<vmem>>, vector<128x32xf32>,
    %c1_i32 = arith.constant 1 : i32
    %9 = arith.cmpi eq, %arg1, %c1_i32 : i32
    %10 = arith.extui %9 : i1 to i32
    %c0_i32_8 = arith.constant 0 : i32
    %11 = arith.cmpi ne, %10, %c0_i32_8 : i32
    scf.if %11 {
      %c0_9 = arith.constant 0 : index
      %c0_10 = arith.constant 0 : index
      %12 = vector.load %arg7[%c0_9, %c0_10] : memref<128x32xf32, #tpu.memory_space<vmem>>, vector<128x32xf32>
      %13 = arith.truncf %12 : vector<128x32xf32> to vector<128x32xbf16>
      %c0_11 = arith.constant 0 : index
      %c0_12 = arith.constant 0 : index
      %14 = vector.load %arg4[%c0_11, %c0_12] : memref<32x128xbf16, #tpu.memory_space<vmem>>, vector<32x128xbf16>
      %cst_13 = arith.constant dense<0.000000e+00> : vector<128x128xf32>
      %15 = tpu.matmul %13, %14, %cst_13 {dimension_numbers = #tpu.dot_dimension_numbers<[1], [0], [0], [1], [0, 0, 1, 1], [], []>} : vector<128x32xbf16>, vector<32x128xbf16>, vector<128x128xf32> -> vector<128x128xf32>
      %c0_14 = arith.constant 0 : index
      %c0_15 = arith.constant 0 : index
      %16 = vector.load %arg5[%c0_14, %c0_15] : memref<1x128xf32, #tpu.memory_space<vmem>>, vector<1x128xf32>
      %17 = vector.broadcast %16 : vector<1x128xf32> to vector<128x128xf32>
      %18 = arith.addf %15, %17 : vector<128x128xf32>
      %c0_16 = arith.constant 0 : index
      %c0_17 = arith.constant 0 : index
      %19 = vector.load %arg6[%c0_16, %c0_17] : memref<128x128xf32, #tpu.memory_space<vmem>>, vector<128x128xf32>
      tpu.vector_store %arg6[%c0_16, %c0_17], %18 {strides = array<i32>} : memref<128x128xf32, #tpu.memory_space<vmem>>, vector<128x128xf32>,
    } else {
    }
    return
  }
  func.func @transform_0(%arg0: i32, %arg1: i32) -> (i32, i32) {
    %c0_i32 = arith.constant 0 : i32
    return %arg0, %arg1 : i32, i32
  }
  func.func @transform_1(%arg0: i32, %arg1: i32) -> (i32, i32) {
    %c0_i32 = arith.constant 0 : i32
    %c0_i32_0 = arith.constant 0 : i32
    return %arg1, %c0_i32 : i32, i32
  }
  func.func @transform_2(%arg0: i32, %arg1: i32) -> (i32, i32) {
    %c0_i32 = arith.constant 0 : i32
    %c0_i32_0 = arith.constant 0 : i32
    %c0_i32_1 = arith.constant 0 : i32
    return %c0_i32, %c0_i32_0 : i32, i32
  }
  func.func @transform_3(%arg0: i32, %arg1: i32) -> (i32, i32) {
    %c0_i32 = arith.constant 0 : i32
    %c0_i32_0 = arith.constant 0 : i32
    %c0_i32_1 = arith.constant 0 : i32
    return %c0_i32, %c0_i32_0 : i32, i32
  }
  func.func @transform_4(%arg0: i32, %arg1: i32) -> (i32, i32) {
    %c0_i32 = arith.constant 0 : i32
    %c0_i32_0 = arith.constant 0 : i32
    return %arg0, %c0_i32 : i32, i32
  }
}

</mosaic_0001>

<bundles_post_ra>
// kernel: tpu_custom_call.1
= control target key start
LH: loop header
LB: loop body
LE: loop exit
PB: predicated region body
PF: predicated region fallthrough
CT: control target
= control target key end

     0   :  { %s1597_s0 = inlined_call_operand.hbm [shape: bf16[256,256], index: 0, kind: input, shape index: {}]   ;;  %s1598_s1 = inlined_call_operand.vmem [shape: bf16[256,32], index: 1, kind: input, shape index: {}]   ;;  %s1599_s2 = inlined_call_operand.vmem [shape: bf16[32,128], index: 2, kind: input, shape index: {}]   ;;  %s1600_s3 = inlined_call_operand.vmem [shape: f32[1,128], index: 3, kind: input, shape index: {}]   ;;  %s1601_s4 = inlined_call_operand.hbm [shape: f32[256,128], index: 4, kind: output, shape index: {}]  }
   0x1   :  { %1606 = sst [smem:[#allocation13_spill]] %s1601_s4 }
   0x2   :  { %9 = vsyncpa [#allocation4], 0 }
   0x3   :  { %11 = vsyncpa [#allocation4 + $0x1], 0 }
   0x4   :  { %12 = vsyncpa [#allocation5], 0 }
   0x5   :  { %14 = vsyncpa [#allocation5 + $0x1], 0  ;;  %s1308_s15 = smov 0   ;;  %s1310_s16 = smov 0  }
   0x6   :  { %s1312_s17 = smov 0   ;;  %s1314_s18 = smov 0  }
   0x7   :  { %s1316_s19 = smov 0   ;;  %s1318_s20 = smov 0  }
   0x8   :  { %s1320_s21 = smov 0   ;;  %s1322_s22 = smov 0  }
   0x9   :  { %s1324_s23 = smov 0   ;;  %s1326_s24 = smov 0  }
   0xa   :  { %s1328_s25 = smov 0  }
   0xb LB: > { %1607 = sst [smem:[#allocation9_spill]] %s1253_s20  ;;  %s852_s26 = sadd.s32 4294967295, %s1273_s25   ;;  %s1273_s25 = sphi %s1328_s25, %s20_s25   ;;  %s1269_s24 = sphi %s1326_s24, %s1629_s24   ;;  %s1265_s23 = sphi %s1324_s23, %s1628_s23   ;;  %s1261_s22 = sphi %s1322_s22, %s1627_s22   ;;  %s1257_s21 = sphi %s1320_s21, %s1626_s21   ;;  %s1253_s20 = sphi %s1318_s20, %s1618_s20   ;;  %s1249_s19 = sphi %s1316_s19, %s1625_s19   ;;  %s1245_s18 = sphi %s1314_s18, %s1624_s18   ;;  %s1241_s17 = sphi %s1312_s17, %s1623_s17   ;;  %s1237_s16 = sphi %s1310_s16, %s1622_s16   ;;  %s1233_s15 = sphi %s1308_s15, %s1621_s15  }
   0xc   : > { %s853_s27 = sadd.s32 4294967294, %s1273_s25   ;;  %s29_s28 = sadd.s32 1, %s1265_s23 }
   0xd   : > { %s32_s29 = sadd.s32 1, %s1269_s24  ;;  %p30_p0 = scmp.ge.s32.totalorder %s29_s28, 2 }
   0xe   : > { %s41_s30 = sadd.s32 1, %s1253_s20  ;;  %p48_p1 = scmp.ne.s32.totalorder %s1253_s20, %s1249_s19 }
   0xf   : > { %p49_p2 = scmp.eq.s32.totalorder %s1273_s25, 0  ;;  %s1631_s28 = smov (%p30_p0, %s29_s28), 0 }
  0x10   : > { %1608 = sst [smem:[#allocation10_spill]] %s1631_s28  ;;  %s1633_s29 = smov (!%p30_p0, %s32_s29), %s1269_s24 }
  0x11   : > { %s37_s5 = ssub.s32 %s1265_s23, %s1631_s28  ;;  %p1374_p3 = por %p49_p2, %p48_p1 }
  0x12   : > { %p34_p4 = scmp.ge.s32.totalorder %s1633_s29, 2  ;;  %p54_p5 = scmp.ne.s32.totalorder %s1249_s19, %s1245_s18 }
  0x13   : > { %p55_p6 = scmp.eq.s32.totalorder %s852_s26, 0  ;;  %s135_s7 = sadd.s32 1, %s1241_s17 }
  0x14   : > { %s1635_s29 = smov (%p34_p4, %s1633_s29), 0  ;;  %p145_p8 = scmp.ne.s32.totalorder %s1241_s17, %s1237_s16 }
  0x15   : > { %1610 = sst [smem:[#allocation11_spill]] %s1635_s29  ;;  %p1382_p7 = por %p55_p6, %p54_p5 }
  0x16   : > { %s36_s9 = ssub.s32 %s1269_s24, %s1635_s29  ;;  %p146_p9 = scmp.eq.s32.totalorder %s852_s26, 3 }
  0x17   : > { %s38_s10 = sor.u32 %s37_s5, %s36_s9  ;;  %p133_p10 = scmp.eq.s32.totalorder %s36_s9, 0 }
  0x18   : > { %p39_p11 = scmp.eq.s32.totalorder %s38_s10, 0  ;;  %p1390_p12 = por %p146_p9, %p145_p8 }
  0x19   : > { %s1395_s12 = scalar_select %p133_p10, %s1241_s17, %s135_s7  }
  0x1a   : > { %s1398_s13 = scalar_select %p39_p11, %s1253_s20, %s41_s30  }
  0x1b   : > { %p151_p13 = scmp.ne.s32.totalorder %s1237_s16, %s1233_s15  ;;  %p152_p0 = scmp.eq.s32.totalorder %s853_s27, 3 }
  0x1c   : > { %1613 = sst [smem:[#allocation12_spill]] %s1398_s13  ;;  %p1011_p1 = scmp.lt.s32.totalorder %s1273_s25, 4 }
  0x1d   : > { %p1403_p2 = por %p152_p0, %p151_p13  ;;  %s178_s18 = sand.u32 1, %s1253_s20  }
  0x1e   : > { %s856_s26 = sshll.u32 %s178_s18, 6  ;;  %s899_s5 = sshll.u32 %s1269_s24, 5 }
  0x1f   : > { %s188_s9 = sadd.s32 %s1265_s23, %s899_s5  ;;  %s182_s10 = scalar_lea.vmem [#allocation3], %s856_s26 }
  0x20   : > { %s191_s29 = sshll.u32 %s182_s10, 4  ;;  %s859_s28 = sshll.u32 %s188_s9, 6  ;;  %s192_s29 = int_to_ptr.vmem [resolvable:$true] %s191_s29 }
  0x21   : > { %s190_s30 = scalar_lea.hbm %s1597_s0, %s859_s28  ;;  %p1415_p4 = pnand %p1011_p1, %p1374_p3 }
  0x22   : > { %s179_s13 = scalar_lea.sflag [#allocation4], %s178_s18  ;;  %s1138_s20 = scalar_lea.vmem %s192_s29, 1024 }
  0x23   : > { %p1127_p5 = pneg %p1415_p4  ;;  %p1139_p6 = scmp.ne.s32.totalorder %s192_s29, %s1138_s20 }
  0x24   : > { %s1275_s26 = smov [#allocation3]  }
  0x25   : > { %p1141_p8 = pnand %p1139_p6, %p1127_p5  ;;  %s1143_s5 = sshll.u32 %s1275_s26, 4  ;;  %s1144_s5 = int_to_ptr.vmem [resolvable:$false] %s1143_s5 }
  0x26   : > { %s1145_s9 = scalar_lea.vmem %s1144_s5, 2048  ;;  %p1146_p10 = scmp.lt.s32.totalorder %s192_s29, %s1144_s5 }
  0x27   : > { %p1142_p9 = pneg %p1141_p8  ;;  %p1147_p11 = scmp.lt.s32.totalorder %s1145_s9, %s1138_s20 }
  0x29   : > { %p1148_p13 = por %p1147_p11, %p1146_p10 }
  0x2b   : > { %p1149_p0 = pnand %p1148_p13, %p1142_p9 }
  0x2d   : > { %1152 = shalt.err (!%p1149_p0)
}
  0x2e   : > { %s1276_s4 = smov 128   ;;  %s1277_s28 = smov 64  }
  0x2f   : > { %s1278_s6 = smov 4   ;;  %p860_p3 = scmp.ge.s32.totalorder %s1273_s25, 1 }
  0x30   : > { %1006 = dma.hbm_to_vmem [thread:$0]  (!%p1415_p4), %s190_s30, 1024, %s192_s29, %s179_s13, %s1276_s4, %s1277_s28, %s1278_s6  }
  0x31   : > { %p208_p1 = scmp.lt.s32.totalorder %s1273_s25, 5 }
  0x33   : > { %p209_p5 = pnand %p860_p3, %p208_p1 }
  0x34   : > { %s214_s18 = sand.u32 (!%p209_p5), 1, %s1249_s19  }
  0x35   : > { %212 = sbr.rel (%p209_p5) target bundleno = 563 (0x233), region = 36  ;;  %s861_s10 = sshll.u32 (!%p209_p5), %s214_s18, 6 }
  0x36   : > { %s215_s20 = scalar_lea.sflag (!%p209_p5), [#allocation4], %s214_s18  ;;  %s1426_s7 = scalar_lea.vmem (!%p209_p5), [#allocation3], %s861_s10 }
  0x3a   : > { %1224 = dma.done.wait (%p1382_p7), %s215_s20, 1024  }
  0x3b   : > { %1226 = vsyncadd (%p1382_p7), %s215_s20, 4294966272  ;;  %s245_s29 = sand.u32 1, %s1237_s16   ;;  %s863_s13 = sshll.u32 %s1257_s21, 4 }
  0x3c   : > { %s862_s30 = sshll.u32 %s245_s29, 7  ;;  %p250_p4 = scmp.lt.s32.totalorder %s863_s13, 31 }
  0x3d   : > { %s1441_s4 = scalar_lea.vmem [#allocation6], %s862_s30  ;;  %p865_p6 = scmp.ne.s32.totalorder %s1257_s21, 0 }
  0x3e   : > { %s1637_s13 = smov (!%p250_p4, %s863_s13), 31 }
  0x3f   : > { %s864_s27 = sshll.u32 %s1637_s13, 2  ;;  %260 = sbr.rel (%p865_p6) target bundleno = 77 (0x4d), region = 44 }
  0x40   : > { %s1439_s9 = scalar_lea.vmem %s1598_s1, %s864_s27 }
  0x44   : > { %vm261_vm0 = vcmask 261120   ;;  %v1279_v0 = vmov 0.0  }
  0x45   : > { %262 = vst.msk [vmem:[#allocation2] sm:$0xff] %vm261_vm0, %v1279_v0  ;;  %263 = vst.msk [vmem:[#allocation2 + $0x8] sm:$0xff] %vm261_vm0, %v1279_v0 }
  0x46   : > { %264 = vst.msk [vmem:[#allocation2 + $0x10] sm:$0xff] %vm261_vm0, %v1279_v0  ;;  %265 = vst.msk [vmem:[#allocation2 + $0x18] sm:$0xff] %vm261_vm0, %v1279_v0 }
  0x47   : > { %266 = vst.msk [vmem:[#allocation2 + $0x20] sm:$0xff] %vm261_vm0, %v1279_v0  ;;  %267 = vst.msk [vmem:[#allocation2 + $0x28] sm:$0xff] %vm261_vm0, %v1279_v0 }
  0x48   : > { %268 = vst.msk [vmem:[#allocation2 + $0x30] sm:$0xff] %vm261_vm0, %v1279_v0  ;;  %269 = vst.msk [vmem:[#allocation2 + $0x38] sm:$0xff] %vm261_vm0, %v1279_v0 }
  0x49   : > { %270 = vst.msk [vmem:[#allocation2 + $0x40] sm:$0xff] %vm261_vm0, %v1279_v0  ;;  %271 = vst.msk [vmem:[#allocation2 + $0x48] sm:$0xff] %vm261_vm0, %v1279_v0 }
  0x4a   : > { %272 = vst.msk [vmem:[#allocation2 + $0x50] sm:$0xff] %vm261_vm0, %v1279_v0  ;;  %273 = vst.msk [vmem:[#allocation2 + $0x58] sm:$0xff] %vm261_vm0, %v1279_v0 }
  0x4b   : > { %274 = vst.msk [vmem:[#allocation2 + $0x60] sm:$0xff] %vm261_vm0, %v1279_v0  ;;  %275 = vst.msk [vmem:[#allocation2 + $0x68] sm:$0xff] %vm261_vm0, %v1279_v0 }
  0x4c   : > { %276 = vst.msk [vmem:[#allocation2 + $0x70] sm:$0xff] %vm261_vm0, %v1279_v0  ;;  %277 = vst.msk [vmem:[#allocation2 + $0x78] sm:$0xff] %vm261_vm0, %v1279_v0 }
  0x4d PF: > { %v1107_v1 = vld [vmem:[%s1439_s9 + $0x38] sm:$0xff]   ;;  %v1108_v2 = vld [vmem:[%s1439_s9 + $0x30] sm:$0xff]   ;;  %v1109_v3 = vld [vmem:[%s1439_s9 + $0x28] sm:$0xff]   ;;  %vm535_vm1 = vcmask 261120   ;;  %p882_p7 = scmp.ne.s32.totalorder %s1257_s21, 1 }
  0x4e   : > { %927 = vmatprep.subr.bf16.mxu0 %v1107_v1  ;;  %979 = vmatprep.subr.bf16.mxu1 %v1107_v1  ;;  %v1110_v4 = vld [vmem:[%s1439_s9 + $0x20] sm:$0xff]   ;;  %v1111_v7 = vld [vmem:[%s1439_s9 + $0x18] sm:$0xff]   ;;  %v1112_v8 = vld [vmem:[%s1439_s9 + $0x10] sm:$0xff]  }
  0x4f   : > { %928 = vmatpush3.bf16.msra.mxu0 %v1107_v1  ;;  %987 = vmatpush3.bf16.msra.mxu1 %v1107_v1  ;;  %v1115_v5 = vld [vmem:[%s1426_s7] sm:$0xff]   ;;  %v1113_v9 = vld [vmem:[%s1439_s9 + $0x8] sm:$0xff]   ;;  %v1119_v13 = vld [vmem:[%s1426_s7 + $0x10] sm:$0xff]  }
  0x50   : > { %929 = vmatprep.subr.bf16.mxu0 %v1108_v2  ;;  %980 = vmatprep.subr.bf16.mxu1 %v1108_v2  ;;  %v1116_v6 = vld [vmem:[%s1426_s7 + $0x20] sm:$0xff]   ;;  %v1117_v11 = vld [vmem:[%s1426_s7 + $0x8] sm:$0xff]   ;;  %v1120_v14 = vld [vmem:[%s1426_s7 + $0x30] sm:$0xff]  }
  0x51   : > { %943 = vmatprep.mubr.bf16.mxu0 %v1115_v5  ;;  %951 = vmatprep.mubr.bf16.mxu1 %v1116_v6  ;;  %v1114_v10 = vld [vmem:[%s1439_s9] sm:$0xff]   ;;  %v1118_v12 = vld [vmem:[%s1426_s7 + $0x28] sm:$0xff]   ;;  %v1121_v15 = vld [vmem:[%s1426_s7 + $0x18] sm:$0xff]  }
  0x52   : > { %v1122_v16 = vld [vmem:[%s1426_s7 + $0x38] sm:$0xff]   ;;  %v280_v17 = vld [vmem:[#allocation2 + $0x10] sm:$0xff]  ;;  %v278_v21 = vld [vmem:[#allocation2] sm:$0xff] }
  0x53   : > { %930 = vmatpush3.bf16.msra.mxu0 %v1108_v2  ;;  %988 = vmatpush3.bf16.msra.mxu1 %v1108_v2  ;;  %v288_v18 = vld [vmem:[#allocation2 + $0x50] sm:$0xff]  ;;  %v286_v22 = vld [vmem:[#allocation2 + $0x40] sm:$0xff]  ;;  %v281_v27 = vld [vmem:[#allocation2 + $0x18] sm:$0xff] }
  0x54   : > { %931 = vmatprep.subr.bf16.mxu0 %v1109_v3  ;;  %981 = vmatprep.subr.bf16.mxu1 %v1109_v3  ;;  %v289_v28 = vld [vmem:[#allocation2 + $0x58] sm:$0xff]  ;;  %v279_v33 = vld [vmem:[#allocation2 + $0x8] sm:$0xff]  ;;  %v284_v39 = vld [vmem:[#allocation2 + $0x30] sm:$0xff] }
  0x55   : > { %v287_v34 = vld [vmem:[#allocation2 + $0x48] sm:$0xff]  ;;  %v292_v40 = vld [vmem:[#allocation2 + $0x70] sm:$0xff]  ;;  %v282_v45 = vld [vmem:[#allocation2 + $0x20] sm:$0xff] }
  0x56   : > { %v290_v46 = vld [vmem:[#allocation2 + $0x60] sm:$0xff]  ;;  %v285_v51 = vld [vmem:[#allocation2 + $0x38] sm:$0xff]  ;;  %v283_v57 = vld [vmem:[#allocation2 + $0x28] sm:$0xff] }
  0x57   : > { %932 = vmatpush3.bf16.msra.mxu0 %v1109_v3  ;;  %989 = vmatpush3.bf16.msra.mxu1 %v1109_v3  ;;  %v293_v52 = vld [vmem:[#allocation2 + $0x78] sm:$0xff]  ;;  %v291_v58 = vld [vmem:[#allocation2 + $0x68] sm:$0xff] }
  0x58   : > { %933 = vmatprep.subr.bf16.mxu0 %v1110_v4  ;;  %982 = vmatprep.subr.bf16.mxu1 %v1110_v4 }
  0x5b   : > { %934 = vmatpush3.bf16.msra.mxu0 %v1110_v4  ;;  %990 = vmatpush3.bf16.msra.mxu1 %v1110_v4 }
  0x5c   : > { %935 = vmatprep.subr.bf16.mxu0 %v1111_v7  ;;  %983 = vmatprep.subr.bf16.mxu1 %v1111_v7 }
  0x5f   : > { %936 = vmatpush3.bf16.msra.mxu0 %v1111_v7  ;;  %991 = vmatpush3.bf16.msra.mxu1 %v1111_v7 }
  0x60   : > { %937 = vmatprep.subr.bf16.mxu0 %v1112_v8  ;;  %984 = vmatprep.subr.bf16.mxu1 %v1112_v8 }
  0x63   : > { %938 = vmatpush3.bf16.msra.mxu0 %v1112_v8  ;;  %992 = vmatpush3.bf16.msra.mxu1 %v1112_v8 }
  0x64   : > { %939 = vmatprep.subr.bf16.mxu0 %v1113_v9  ;;  %985 = vmatprep.subr.bf16.mxu1 %v1113_v9 }
  0x67   : > { %940 = vmatpush3.bf16.msra.mxu0 %v1113_v9  ;;  %993 = vmatpush3.bf16.msra.mxu1 %v1113_v9 }
  0x68   : > { %941 = vmatprep.subr.bf16.mxu0 %v1114_v10  ;;  %986 = vmatprep.subr.bf16.mxu1 %v1114_v10 }
  0x6b   : > { %942 = vmatpush3.bf16.msra.mxu0 %v1114_v10  ;;  %994 = vmatpush3.bf16.msra.mxu1 %v1114_v10 }
  0x6e   : > { %944 = vmatmul.mubr.bf16.vlgmr.msra.gmra.mxu0 %v1117_v11  ;;  %952 = vmatmul.mubr.bf16.vlgmr.msra.gmra.mxu1 %v1118_v12 }
  0x6f   : > { %947 = vmatprep.mubr.bf16.mxu0 %v1119_v13  ;;  %955 = vmatprep.mubr.bf16.mxu1 %v1120_v14 }
  0x76   : > { %948 = vmatmul.mubr.bf16.gmra.mxu0 %v1121_v15  ;;  %956 = vmatmul.mubr.bf16.gmra.mxu1 %v1122_v16 }
 0x12e   : > { %v945_v19 = vpop.f32.mrf.mxu0  ;;  %v953_v20 = vpop.f32.mrf.mxu1 }
 0x12f   : > { %v521_v23 = vadd.f32 %v945_v19, %v280_v17  ;;  %v529_v24 = vadd.f32 %v953_v20, %v288_v18 }
 0x130   : > { %v456_v25 = vpop.f32.mrf.mxu0  ;;  %v488_v26 = vpop.f32.mrf.mxu1 }
 0x131   : > { %538 = vst.msk [vmem:[#allocation2 + $0x10] sm:$0xff] %vm535_vm1, %v521_v23  ;;  %546 = vst.msk [vmem:[#allocation2 + $0x50] sm:$0xff] %vm535_vm1, %v529_v24  ;;  %v519_v29 = vadd.f32 %v456_v25, %v278_v21  ;;  %v527_v30 = vadd.f32 %v488_v26, %v286_v22 }
 0x132   : > { %v946_v31 = vpop.f32.mrf.mxu0  ;;  %v954_v32 = vpop.f32.mrf.mxu1 }
 0x133   : > { %536 = vst.msk [vmem:[#allocation2] sm:$0xff] %vm535_vm1, %v519_v29  ;;  %544 = vst.msk [vmem:[#allocation2 + $0x40] sm:$0xff] %vm535_vm1, %v527_v30  ;;  %v522_v35 = vadd.f32 %v946_v31, %v281_v27  ;;  %v530_v36 = vadd.f32 %v954_v32, %v289_v28 }
 0x134   : > { %v459_v37 = vpop.f32.mrf.mxu0  ;;  %v491_v38 = vpop.f32.mrf.mxu1 }
 0x135   : > { %539 = vst.msk [vmem:[#allocation2 + $0x18] sm:$0xff] %vm535_vm1, %v522_v35  ;;  %547 = vst.msk [vmem:[#allocation2 + $0x58] sm:$0xff] %vm535_vm1, %v530_v36  ;;  %v520_v41 = vadd.f32 %v459_v37, %v279_v33  ;;  %v528_v42 = vadd.f32 %v491_v38, %v287_v34 }
 0x136   : > { %v949_v43 = vpop.f32.mrf.mxu0  ;;  %v957_v44 = vpop.f32.mrf.mxu1 }
 0x137   : > { %537 = vst.msk [vmem:[#allocation2 + $0x8] sm:$0xff] %vm535_vm1, %v520_v41  ;;  %545 = vst.msk [vmem:[#allocation2 + $0x48] sm:$0xff] %vm535_vm1, %v528_v42  ;;  %v525_v47 = vadd.f32 %v949_v43, %v284_v39  ;;  %v533_v48 = vadd.f32 %v957_v44, %v292_v40 }
 0x138   : > { %v472_v49 = vpop.f32.mrf.mxu0  ;;  %v504_v50 = vpop.f32.mrf.mxu1 }
 0x139   : > { %542 = vst.msk [vmem:[#allocation2 + $0x30] sm:$0xff] %vm535_vm1, %v525_v47  ;;  %550 = vst.msk [vmem:[#allocation2 + $0x70] sm:$0xff] %vm535_vm1, %v533_v48  ;;  %v523_v53 = vadd.f32 %v472_v49, %v282_v45  ;;  %v531_v54 = vadd.f32 %v504_v50, %v290_v46 }
 0x13a   : > { %v950_v55 = vpop.f32.mrf.mxu0  ;;  %v958_v56 = vpop.f32.mrf.mxu1 }
 0x13b   : > { %540 = vst.msk [vmem:[#allocation2 + $0x20] sm:$0xff] %vm535_vm1, %v523_v53  ;;  %548 = vst.msk [vmem:[#allocation2 + $0x60] sm:$0xff] %vm535_vm1, %v531_v54  ;;  %v526_v59 = vadd.f32 %v950_v55, %v285_v51  ;;  %v534_v60 = vadd.f32 %v958_v56, %v293_v52  ;;  %555 = sbr.rel (%p882_p7) target bundleno = 539 (0x21b), region = 48 }
 0x13c   : > { %v475_v61 = vpop.f32.mrf.mxu0  ;;  %v507_v62 = vpop.f32.mrf.mxu1 }
 0x13d   : > { %543 = vst.msk [vmem:[#allocation2 + $0x38] sm:$0xff] %vm535_vm1, %v526_v59  ;;  %551 = vst.msk [vmem:[#allocation2 + $0x78] sm:$0xff] %vm535_vm1, %v534_v60  ;;  %v524_v63 = vadd.f32 %v475_v61, %v283_v57  ;;  %v532_v0 = vadd.f32 %v507_v62, %v291_v58 }
 0x13f   : > { %541 = vst.msk [vmem:[#allocation2 + $0x28] sm:$0xff] %vm535_vm1, %v524_v63  ;;  %549 = vst.msk [vmem:[#allocation2 + $0x68] sm:$0xff] %vm535_vm1, %v532_v0 }
 0x140   : > { %v1123_v1 = vld [vmem:[%s1599_s2 + $0x8] sm:$0xff]   ;;  %v1124_v2 = vld [vmem:[%s1599_s2] sm:$0xff]   ;;  %v558_v8 = vld [vmem:[#allocation2 + $0x10] sm:$0xff] }
 0x141   : > { %959 = vmatprep.subr.bf16.mxu0 %v1123_v1  ;;  %995 = vmatprep.subr.bf16.mxu1 %v1123_v1  ;;  %v556_v3 = vld [vmem:[#allocation2] sm:$0xff]  ;;  %v557_v4 = vld [vmem:[#allocation2 + $0x8] sm:$0xff]  ;;  %v559_v9 = vld [vmem:[#allocation2 + $0x18] sm:$0xff] }
 0x142   : > { %v564_v5 = vld [vmem:[#allocation2 + $0x40] sm:$0xff]  ;;  %960 = vmatpush3.bf16.msra.mxu0 %v1123_v1  ;;  %997 = vmatpush3.bf16.msra.mxu1 %v1123_v1  ;;  %v572_v6 = vpack.c.bf16 %v557_v4, %v556_v3  ;;  %v565_v7 = vld [vmem:[#allocation2 + $0x48] sm:$0xff]  ;;  %v566_v11 = vld [vmem:[#allocation2 + $0x50] sm:$0xff]  ;;  %v573_v17 = vpack.c.bf16 %v559_v9, %v558_v8 }
 0x143   : > { %961 = vmatprep.subr.bf16.mxu0 %v1124_v2  ;;  %996 = vmatprep.subr.bf16.mxu1 %v1124_v2  ;;  %v576_v10 = vpack.c.bf16 %v565_v7, %v564_v5  ;;  %v567_v12 = vld [vmem:[#allocation2 + $0x58] sm:$0xff]  ;;  %v560_v13 = vld [vmem:[#allocation2 + $0x20] sm:$0xff]  ;;  %v562_v21 = vld [vmem:[#allocation2 + $0x30] sm:$0xff] }
 0x144   : > { %963 = vmatprep.mubr.msk.bf16.mxu0 %vm535_vm1, %v572_v6  ;;  %v568_v15 = vld [vmem:[#allocation2 + $0x60] sm:$0xff]  ;;  %v577_v18 = vpack.c.bf16 %v567_v12, %v566_v11  ;;  %v563_v22 = vld [vmem:[#allocation2 + $0x38] sm:$0xff]  ;;  %v570_v23 = vld [vmem:[#allocation2 + $0x70] sm:$0xff] }
 0x145   : > { %971 = vmatprep.mubr.msk.bf16.mxu1 %vm535_vm1, %v576_v10  ;;  %v571_v24 = vld [vmem:[#allocation2 + $0x78] sm:$0xff]  ;;  %v575_v25 = vpack.c.bf16 %v563_v22, %v562_v21  ;;  %v883_v27 = vld [vmem:[%s1600_s3] ss:$0 sm:$0xff] }
 0x146   : > { %v561_v14 = vld [vmem:[#allocation2 + $0x28] sm:$0xff]  ;;  %962 = vmatpush3.bf16.msra.mxu0 %v1124_v2  ;;  %998 = vmatpush3.bf16.msra.mxu1 %v1124_v2  ;;  %v579_v26 = vpack.c.bf16 %v571_v24, %v570_v23 }
 0x147   : > { %v569_v16 = vld [vmem:[#allocation2 + $0x68] sm:$0xff]  ;;  %v574_v19 = vpack.c.bf16 %v561_v14, %v560_v13 }
 0x148   : > { %v578_v20 = vpack.c.bf16 %v569_v16, %v568_v15 }
 0x149   : > { %964 = vmatmul.mubr.msk.bf16.vlgmr.msra.gmra.mxu0 %vm535_vm1, %v573_v17  ;;  %972 = vmatmul.mubr.msk.bf16.vlgmr.msra.gmra.mxu1 %vm535_vm1, %v577_v18 }
 0x14a   : > { %967 = vmatprep.mubr.msk.bf16.mxu0 %vm535_vm1, %v574_v19  ;;  %975 = vmatprep.mubr.msk.bf16.mxu1 %vm535_vm1, %v578_v20 }
 0x151   : > { %968 = vmatmul.mubr.msk.bf16.gmra.mxu0 %vm535_vm1, %v575_v25  ;;  %976 = vmatmul.mubr.msk.bf16.gmra.mxu1 %vm535_vm1, %v579_v26 }
 0x209   : > { %v965_v28 = vpop.f32.mrf.mxu0  ;;  %v973_v29 = vpop.f32.mrf.mxu1 }
 0x20a   : > { %v670_v30 = vadd.f32 %v965_v28, %v883_v27  ;;  %v702_v31 = vadd.f32 %v973_v29, %v883_v27 }
 0x20b   : > { %v661_v32 = vpop.f32.mrf.mxu0  ;;  %v693_v33 = vpop.f32.mrf.mxu1 }
 0x20c   : > { %726 = vst [vmem:[%s1441_s4 + $0x10] sm:$0xff] %v670_v30  ;;  %734 = vst [vmem:[%s1441_s4 + $0x50] sm:$0xff] %v702_v31  ;;  %v662_v34 = vadd.f32 %v883_v27, %v661_v32  ;;  %v694_v35 = vadd.f32 %v883_v27, %v693_v33 }
 0x20d   : > { %v966_v36 = vpop.f32.mrf.mxu0  ;;  %v974_v37 = vpop.f32.mrf.mxu1 }
 0x20e   : > { %724 = vst [vmem:[%s1441_s4] sm:$0xff] %v662_v34  ;;  %732 = vst [vmem:[%s1441_s4 + $0x40] sm:$0xff] %v694_v35  ;;  %v673_v38 = vadd.f32 %v966_v36, %v883_v27  ;;  %v705_v39 = vadd.f32 %v974_v37, %v883_v27 }
 0x20f   : > { %v664_v40 = vpop.f32.mrf.mxu0  ;;  %v696_v41 = vpop.f32.mrf.mxu1 }
 0x210   : > { %727 = vst [vmem:[%s1441_s4 + $0x18] sm:$0xff] %v673_v38  ;;  %735 = vst [vmem:[%s1441_s4 + $0x58] sm:$0xff] %v705_v39  ;;  %v665_v42 = vadd.f32 %v883_v27, %v664_v40  ;;  %v697_v43 = vadd.f32 %v883_v27, %v696_v41 }
 0x211   : > { %v969_v44 = vpop.f32.mrf.mxu0  ;;  %v977_v45 = vpop.f32.mrf.mxu1 }
 0x212   : > { %725 = vst [vmem:[%s1441_s4 + $0x8] sm:$0xff] %v665_v42  ;;  %733 = vst [vmem:[%s1441_s4 + $0x48] sm:$0xff] %v697_v43  ;;  %v686_v46 = vadd.f32 %v969_v44, %v883_v27  ;;  %v718_v47 = vadd.f32 %v977_v45, %v883_v27 }
 0x213   : > { %v677_v48 = vpop.f32.mrf.mxu0  ;;  %v709_v49 = vpop.f32.mrf.mxu1 }
 0x214   : > { %730 = vst [vmem:[%s1441_s4 + $0x30] sm:$0xff] %v686_v46  ;;  %738 = vst [vmem:[%s1441_s4 + $0x70] sm:$0xff] %v718_v47  ;;  %v678_v50 = vadd.f32 %v883_v27, %v677_v48  ;;  %v710_v51 = vadd.f32 %v883_v27, %v709_v49 }
 0x215   : > { %v970_v52 = vpop.f32.mrf.mxu0  ;;  %v978_v53 = vpop.f32.mrf.mxu1 }
 0x216   : > { %728 = vst [vmem:[%s1441_s4 + $0x20] sm:$0xff] %v678_v50  ;;  %736 = vst [vmem:[%s1441_s4 + $0x60] sm:$0xff] %v710_v51  ;;  %v689_v54 = vadd.f32 %v970_v52, %v883_v27  ;;  %v721_v55 = vadd.f32 %v978_v53, %v883_v27 }
 0x217   : > { %v680_v56 = vpop.f32.mrf.mxu0  ;;  %v712_v57 = vpop.f32.mrf.mxu1 }
 0x218   : > { %731 = vst [vmem:[%s1441_s4 + $0x38] sm:$0xff] %v689_v54  ;;  %739 = vst [vmem:[%s1441_s4 + $0x78] sm:$0xff] %v721_v55  ;;  %v681_v58 = vadd.f32 %v883_v27, %v680_v56  ;;  %v713_v59 = vadd.f32 %v883_v27, %v712_v57 }
 0x21a   : > { %729 = vst [vmem:[%s1441_s4 + $0x28] sm:$0xff] %v681_v58  ;;  %737 = vst [vmem:[%s1441_s4 + $0x68] sm:$0xff] %v713_v59 }
 0x21b PF: > { %s900_s20 = sshll.u32 %s1261_s22, 11  ;;  %s1616_s30 = sld [smem:[#allocation13_spill]] }
 0x21c   : > { %s754_s26 = sshll.u32 %s1441_s4, 4  ;;  %s1537_s5 = scalar_lea.sflag [#allocation5], %s245_s29  ;;  %s1533_s26 = int_to_ptr.vmem [resolvable:$true] %s754_s26 }
 0x21d   : > { %s1153_s9 = scalar_lea.vmem %s1533_s26, 2048  ;;  %s1280_s22 = smov [#allocation6]  }
 0x21e   : > { %p1154_p8 = scmp.ne.s32.totalorder %s1533_s26, %s1153_s9  ;;  %s1157_s8 = sshll.u32 %s1280_s22, 4  ;;  %s1158_s8 = int_to_ptr.vmem [resolvable:$false] %s1157_s8 }
 0x21f   : > { %s1159_s28 = scalar_lea.vmem %s1158_s8, 4096  ;;  %p1160_p11 = scmp.lt.s32.totalorder %s1533_s26, %s1158_s8 }
 0x220   : > { %p1155_p9 = pnand %p1154_p8, %p1390_p12  ;;  %p1161_p13 = scmp.lt.s32.totalorder %s1159_s28, %s1153_s9 }
 0x221   : > { %s1530_s27 = scalar_lea.hbm %s1616_s30, %s900_s20 }
 0x222   : > { %p1156_p10 = pneg %p1155_p9  ;;  %p1162_p0 = por %p1161_p13, %p1160_p11 }
 0x224   : > { %p1163_p3 = pnand %p1162_p0, %p1156_p10 }
 0x226   : > { %1166 = shalt.err (!%p1163_p3)
}
 0x227   : > { %s1167_s29 = scalar_lea.hbm %s1530_s27, 2048  ;;  %s1171_s18 = scalar_lea.hbm %s1616_s30, 4096 }
 0x228   : > { %p1168_p1 = scmp.ne.s32.totalorder %s1530_s27, %s1167_s29  ;;  %p1172_p6 = scmp.lt.s32.totalorder %s1530_s27, %s1616_s30 }
 0x229   : > { %p1173_p7 = scmp.lt.s32.totalorder %s1171_s18, %s1167_s29 }
 0x22a   : > { %p1169_p5 = pnand %p1168_p1, %p1390_p12 }
 0x22b   : > { %p1174_p8 = por %p1173_p7, %p1172_p6 }
 0x22c   : > { %p1170_p4 = pneg %p1169_p5 }
 0x22e   : > { %p1175_p9 = pnand %p1174_p8, %p1170_p4 }
 0x230   : > { %1178 = shalt.err (!%p1175_p9)
}
 0x231   : > { %s1281_s20 = smov 128   ;;  %s1282_s7 = smov 8  }
 0x232   : > { %1001 = dma.vmem_to_hbm [thread:$0]  (%p1390_p12), %s1533_s26, 2048, %s1530_s27, %s1537_s5, %s1281_s20, %s1281_s20, %s1282_s7  }
 0x233 PF: > { %p1012_p10 = scmp.ge.s32.totalorder %s1273_s25, 2  ;;  %s769_s13 = sand.u32 1, %s1233_s15  }
 0x234   : > { %s770_s9 = scalar_lea.sflag [#allocation5], %s769_s13 }
 0x235   : > { %p1008_p11 = pnand %p1012_p10, %p1403_p2 }
 0x237   : > { %p1009_p13 = pneg %p1008_p11 }
 0x239   : > { %1228 = dma.done.wait (%p1009_p13), %s770_s9, 2048  }
 0x23a   : > { %1230 = vsyncadd (%p1009_p13), %s770_s9, 4294965248  ;;  %s20_s25 = sadd.s32 1, %s1273_s25   ;;  %s1617_s11 = sld [smem:[#allocation9_spill]] }
 0x23b   : > { %p17_p0 = scmp.ge.s32.totalorder %s20_s25, 6   ;;  %s1618_s20 = sld [smem:[#allocation12_spill]] }
 0x23c   : > { %s1619_s27 = sld [smem:[#allocation10_spill]]  ;;  %s1621_s15 = smov %s1237_s16 }
 0x23d   : > { %s1620_s26 = sld [smem:[#allocation11_spill]]  ;;  %s1622_s16 = smov %s1241_s17 }
 0x23e   : > { %s1623_s17 = smov %s1395_s12  ;;  %s1624_s18 = smov %s1249_s19 }
 0x23f   : > { %s1626_s21 = smov %s1265_s23  ;;  %s1627_s22 = smov %s1269_s24 }
 0x240   : > { %s1625_s19 = smov %s1617_s11  ;;  %19 = sbr.rel (!%p17_p0) target bundleno = 11 (0xb), region = 92 }
 0x242   : > { %s1628_s23 = smov %s1619_s27 }
 0x243   : > { %s1629_s24 = smov %s1620_s26 }
 0x245   :  { %775 = vsyncpa [#allocation4], 1 }
 0x246   :  { %777 = vsyncpa [#allocation4 + $0x1], 1 }
 0x247   :  { %778 = vsyncpa [#allocation5], 1 }
 0x248   :  { %780 = vsyncpa [#allocation5 + $0x1], 1 }

</bundles_post_ra>
